<compile_context>
chip_gen: v6e
topology: v6e:2x2x1
jax: 0.10.0
libtpu: 0.0.40
codegen_flags: <defaults>
</compile_context>

<pallas_src>
import functools

import jax
import jax.numpy as jnp
from jax.experimental import pallas as pl
from jax.experimental.pallas import tpu as pltpu

EPS = 1e-6  # PyTorch F.pairwise_distance default eps (added to the difference)


def _contrastive_loss_kernel(x1_ref, x2_ref, y_ref, loss_ref, *, margin):
    # Upcast to f32 in-VMEM (inputs may be bf16); accumulate in f32.
    x1 = x1_ref[...].astype(jnp.float32)                     # (tile_n, D)
    x2 = x2_ref[...].astype(jnp.float32)
    diff = x1 - x2 + EPS
    sq_sum = jnp.sum(diff * diff, axis=-1, keepdims=True)    # (tile_n, 1)
    d = jnp.sqrt(sq_sum)                                      # only needed for hinge
    y = y_ref[...]                                            # (tile_n, 1) f32
    hinge = jnp.maximum(margin - d, 0.0)
    # Use sq_sum directly for the dissimilar term (exact, avoids sqrt->square).
    loss_ref[...] = (1.0 - y) * sq_sum + y * (hinge * hinge)


def _round_up(x, m):
    return ((x + m - 1) // m) * m


def _choose_tile_n(n, d, itemsize):
    # Keep 2 inputs x 2 pipeline buffers of (tile_n, D) tiles within ~16 MiB.
    budget = 16 * 1024 * 1024
    per_row = 2 * 2 * d * itemsize
    t = budget // max(per_row, 1)
    t = max(8, min(1024, (t // 8) * 8))
    return t


def contrastive_loss(output1, output2, label, *, margin=2.0, tile_n=None):
    n, d = output1.shape
    if tile_n is None:
        tile_n = _choose_tile_n(n, d, jnp.dtype(output1.dtype).itemsize)
    tile_n = min(tile_n, _round_up(n, 8))
    assert tile_n % 8 == 0
    n_pad = _round_up(n, tile_n)
    grid_n = n_pad // tile_n

    label2d = label.reshape(n, 1).astype(jnp.float32)
    x1, x2 = output1, output2
    if n_pad != n:
        pad = ((0, n_pad - n), (0, 0))
        x1 = jnp.pad(x1, pad)
        x2 = jnp.pad(x2, pad)
        label2d = jnp.pad(label2d, pad)

    # TODO(synk): for D << 128, repack the feature axis lane-dense
    # (e.g. (N*D/128, 128) segmented reduction) to use all 128 lanes per vreg.
    kernel = functools.partial(_contrastive_loss_kernel, margin=float(margin))

    per_row = pl.pallas_call(
        kernel,
        out_shape=jax.ShapeDtypeStruct((n_pad, 1), jnp.float32),
        grid=(grid_n,),
        in_specs=[
            pl.BlockSpec((tile_n, d), lambda i: (i, 0)),
            pl.BlockSpec((tile_n, d), lambda i: (i, 0)),
            pl.BlockSpec((tile_n, 1), lambda i: (i, 0)),
        ],
        out_specs=pl.BlockSpec((tile_n, 1), lambda i: (i, 0)),
        compiler_params=pltpu.CompilerParams(
            dimension_semantics=("parallel",),
            vmem_limit_bytes=32 * 1024 * 1024,
        ),
    )(x1, x2, label2d)

    # Global reduction over the true N rows (padded rows are dropped here).
    return jnp.sum(per_row[:n, 0]) / n


def _reference(output1, output2, label, margin=2.0):
    # Pure-JAX reference matching torch.nn.functional.pairwise_distance semantics.
    d = jnp.sqrt(jnp.sum((output1 - output2 + EPS) ** 2, axis=-1))
    return jnp.mean((1.0 - label) * d**2 + label * jnp.maximum(margin - d, 0.0) ** 2)


if __name__ == "__main__":
    key = jax.random.PRNGKey(0)
    k1, k2, k3, k4, k5, k6 = jax.random.split(key, 6)

    # Test 1: original toy shape, f32, single tile.
    N, D = 8, 32
    o1 = jax.random.normal(k1, (N, D), dtype=jnp.float32)
    o2 = jax.random.normal(k2, (N, D), dtype=jnp.float32)
    lab = jax.random.bernoulli(k3, 0.5, (N,)).astype(jnp.float32)

    loss = contrastive_loss(o1, o2, lab)
    jax.block_until_ready(loss)
    ref = _reference(o1, o2, lab)
    assert jnp.allclose(loss, ref, rtol=1e-5, atol=1e-5), (loss, ref)

    # Test 2: ragged N, bf16 inputs, forced multi-tile grid (exercises padding,
    # in-kernel upcast, and the "parallel" grid path).
    N2, D2 = 100, 256
    o1b = jax.random.normal(k4, (N2, D2), dtype=jnp.bfloat16)
    o2b = jax.random.normal(k5, (N2, D2), dtype=jnp.bfloat16)
    lab2 = jax.random.bernoulli(k6, 0.5, (N2,)).astype(jnp.float32)

    loss2 = contrastive_loss(o1b, o2b, lab2, tile_n=32)
    jax.block_until_ready(loss2)
    ref2 = _reference(o1b.astype(jnp.float32), o2b.astype(jnp.float32), lab2)
    assert jnp.allclose(loss2, ref2, rtol=1e-4, atol=1e-4), (loss2, ref2)

    print("KERNEL_OK")
</pallas_src>

<mosaic_0001>
module attributes {stable_mosaic.version = 11 : i64} {
  func.func @_contrastive_loss_kernel(%arg0: i32, %arg1: memref<8x32xf32, #tpu.memory_space<vmem>>, %arg2: memref<8x32xf32, #tpu.memory_space<vmem>>, %arg3: memref<8x1xf32, #tpu.memory_space<vmem>>, %arg4: memref<8x1xf32, #tpu.memory_space<vmem>>) attributes {dimension_semantics = [#tpu.dimension_semantics<parallel>], iteration_bounds = array<i64: 1>, scalar_prefetch = 0 : i64, scratch_operands = 0 : i64, tpu.core_type = #tpu.core_type<tc>, window_params = [{transform_indices = @transform_0, window_bounds = array<i64: 8, 32>}, {transform_indices = @transform_1, window_bounds = array<i64: 8, 32>}, {transform_indices = @transform_2, window_bounds = array<i64: 8, 1>}, {transform_indices = @transform_3, window_bounds = array<i64: 8, 1>}]} {
    %c0 = arith.constant 0 : index
    %c0_0 = arith.constant 0 : index
    %0 = vector.load %arg1[%c0, %c0_0] : memref<8x32xf32, #tpu.memory_space<vmem>>, vector<8x32xf32>
    %c0_1 = arith.constant 0 : index
    %c0_2 = arith.constant 0 : index
    %1 = vector.load %arg2[%c0_1, %c0_2] : memref<8x32xf32, #tpu.memory_space<vmem>>, vector<8x32xf32>
    %2 = arith.subf %0, %1 : vector<8x32xf32>
    %cst = arith.constant 9.99999997E-7 : f32
    %3 = vector.broadcast %cst : f32 to vector<8x32xf32>
    %4 = arith.addf %2, %3 : vector<8x32xf32>
    %5 = arith.mulf %4, %4 : vector<8x32xf32>
    %cst_3 = arith.constant dense<0.000000e+00> : vector<8xf32>
    %6 = vector.multi_reduction <add>, %5, %cst_3 [1] : vector<8x32xf32> to vector<8xf32>
    %7 = vector.shape_cast %6 : vector<8xf32> to vector<8x1xf32>
    %8 = math.sqrt %7 : vector<8x1xf32>
    %c0_4 = arith.constant 0 : index
    %c0_5 = arith.constant 0 : index
    %9 = vector.load %arg3[%c0_4, %c0_5] : memref<8x1xf32, #tpu.memory_space<vmem>>, vector<8x1xf32>
    %cst_6 = arith.constant 2.000000e+00 : f32
    %10 = vector.broadcast %cst_6 : f32 to vector<8x1xf32>
    %11 = arith.subf %10, %8 : vector<8x1xf32>
    %cst_7 = arith.constant 0.000000e+00 : f32
    %12 = vector.broadcast %cst_7 : f32 to vector<8x1xf32>
    %13 = arith.maximumf %11, %12 : vector<8x1xf32>
    %cst_8 = arith.constant 1.000000e+00 : f32
    %14 = vector.broadcast %cst_8 : f32 to vector<8x1xf32>
    %15 = arith.subf %14, %9 : vector<8x1xf32>
    %16 = arith.mulf %15, %7 : vector<8x1xf32>
    %17 = arith.mulf %13, %13 : vector<8x1xf32>
    %18 = arith.mulf %9, %17 : vector<8x1xf32>
    %19 = arith.addf %16, %18 : vector<8x1xf32>
    %c0_9 = arith.constant 0 : index
    %c0_10 = arith.constant 0 : index
    %20 = vector.load %arg4[%c0_9, %c0_10] : memref<8x1xf32, #tpu.memory_space<vmem>>, vector<8x1xf32>
    tpu.vector_store %arg4[%c0_9, %c0_10], %19 {strides = array<i32>} : memref<8x1xf32, #tpu.memory_space<vmem>>, vector<8x1xf32>,
    return
  }
  func.func @transform_0(%arg0: i32) -> (i32, i32) {
    %c0_i32 = arith.constant 0 : i32
    %c0_i32_0 = arith.constant 0 : i32
    return %arg0, %c0_i32 : i32, i32
  }
  func.func @transform_1(%arg0: i32) -> (i32, i32) {
    %c0_i32 = arith.constant 0 : i32
    %c0_i32_0 = arith.constant 0 : i32
    return %arg0, %c0_i32 : i32, i32
  }
  func.func @transform_2(%arg0: i32) -> (i32, i32) {
    %c0_i32 = arith.constant 0 : i32
    %c0_i32_0 = arith.constant 0 : i32
    return %arg0, %c0_i32 : i32, i32
  }
  func.func @transform_3(%arg0: i32) -> (i32, i32) {
    %c0_i32 = arith.constant 0 : i32
    %c0_i32_0 = arith.constant 0 : i32
    return %arg0, %c0_i32 : i32, i32
  }
}

</mosaic_0001>

<bundles_post_ra>
// kernel: tpu_custom_call.1
= control target key start
LH: loop header
LB: loop body
LE: loop exit
PB: predicated region body
PF: predicated region fallthrough
CT: control target
= control target key end

     0   :  { %8 = vsyncpa [#allocation3], 0  ;;  %s82_s12 = smov [#allocation2]   ;;  %s115_s0 = inlined_call_operand.vmem [shape: f32[8,32], index: 0, kind: input, shape index: {}]   ;;  %s116_s1 = inlined_call_operand.hbm [shape: f32[8,32], index: 1, kind: input, shape index: {}]   ;;  %s117_s2 = inlined_call_operand.vmem [shape: f32[8,1], index: 2, kind: input, shape index: {}]   ;;  %s118_s3 = inlined_call_operand.vmem [shape: f32[8,1], index: 3, kind: output, shape index: {}]  }
   0x1   :  { %s17_s13 = sshll.u32 %s82_s12, 4  ;;  %s18_s13 = int_to_ptr.vmem [resolvable:$true] %s17_s13 }
   0x2   :  { %s68_s14 = scalar_lea.vmem %s18_s13, 128  ;;  %p73_p1 = scmp.lt.s32.totalorder %s18_s13, %s18_s13 }
   0x3   :  { %p69_p0 = scmp.ne.s32.totalorder %s18_s13, %s68_s14  ;;  %p74_p2 = scmp.lt.s32.totalorder %s68_s14, %s68_s14 }
   0x5   :  { %p75_p3 = por %p74_p2, %p73_p1 }
   0x7   :  { %p76_p4 = pnand %p75_p3, %p69_p0 }
   0x9   :  { %79 = shalt.err (!%p76_p4)
}
   0xa   :  { %20 = dma.hbm_to_vmem [thread:$0]  %s116_s1, 128, %s18_s13, [#allocation3]  }
   0xb   :  { %80 = dma.done.wait [#allocation3], 128  }
   0xc   :  { %81 = vsyncadd [#allocation3], 4294967168  ;;  %v26_v0 = vld [vmem:[%s115_s0] sm:$0xff]  ;;  %vm31_vm0 = vcmask 261120   ;;  %vm50_vm3 = vcmask 7168  }
   0xd   :  { %v27_v1 = vld [vmem:[#allocation2] sm:$0xff] }
   0xe   :  { %v28_v2 = vsub.f32 %v26_v0, %v27_v1  ;;  %v42_v12 = vld [vmem:[%s117_s2] sm:$0xff] }
   0xf   :  { %v45_v15 = vsub.f32 1.0, %v42_v12 }
  0x10   :  { %v29_v3 = vadd.f32 1e-06, %v28_v2 }
  0x12   :  { %v30_v4 = vmul.f32 %v29_v3, %v29_v3 }
  0x14   :  { %v32_v5 = vsel %vm31_vm0, %v30_v4, 0.0 }
  0x15   :  { %33 = vadd.xlane.f32.xlu0 %v32_v5 }
  0x9e   :  { %v34_v6 = vpop.xlane.xlu0 %33 }
  0x9f   :  { %58 = vrsqrt.f32 %v34_v6  ;;  %vm37_vm1 = vcmp.eq.f32.partialorder %v34_v6, inf  ;;  %v40_v9 = vand.u32 2147483648, %v34_v6  ;;  %vm39_vm2 = vcmp.eq.f32.partialorder %v34_v6, 0.0 }
  0xa0   :  { %v46_v17 = vmul.f32 %v45_v15, %v34_v6 }
  0xac   :  { %v59_v7 = vpop.eup %58 }
  0xad   :  { %v36_v8 = vmul.f32 %v59_v7, %v34_v6 }
  0xaf   :  { %v38_v10 = vsel %vm37_vm1, %v34_v6, %v36_v8 }
  0xb0   :  { %v41_v11 = vsel %vm39_vm2, %v40_v9, %v38_v10 }
  0xb1   :  { %v43_v13 = vsub.f32 2.0, %v41_v11 }
  0xb3   :  { %v44_v14 = vmax.f32 %v43_v13, 0.0 }
  0xb5   :  { %v47_v16 = vmul.f32 %v44_v14, %v44_v14 }
  0xb7   :  { %v48_v18 = vmul.f32 %v47_v16, %v42_v12 }
  0xb9   :  { %v49_v19 = vadd.f32 %v48_v18, %v46_v17 }
  0xbb   :  { %51 = vst.msk [vmem:[%s118_s3] sm:$0xff] %vm50_vm3, %v49_v19 }
  0xbc   :  { %56 = vsyncpa [#allocation3], 1 }

</bundles_post_ra>
